<compile_context>
chip_gen: v7x
topology: tpu7x:2x2x1
jax: 0.10.0
libtpu: 0.0.40
codegen_flags: <defaults>
</compile_context>

<pallas_src>
import functools

import jax
import jax.numpy as jnp
from jax import lax
from jax.experimental import pallas as pl
from jax.experimental.pallas import tpu as pltpu


_VMEM_LIMIT = 32 * 1024 * 1024  # safe scoped-VMEM limit on v5e / v6e / v7x


def _round_up(x, m):
    return ((x + m - 1) // m) * m


# --------------------------------------------------------------------------- #
# Pass 1 (tiled path): per-tile partial sums of (f - pivot) and (f - pivot)^2.
# Each grid step writes its own (1, lanes) partials -> no cross-step dependence,
# so the row axis is "parallel" (megacore splits it on v7x).
# --------------------------------------------------------------------------- #
def _stats_kernel(f_ref, k_ref, sum_ref, sumsq_ref, *, valid_rows_last, tile_rows):
    d = f_ref[...].astype(jnp.float32) - k_ref[...]          # pivot-centered

    def write(dd):
        sum_ref[...] = jnp.sum(dd, axis=0, keepdims=True)
        sumsq_ref[...] = jnp.sum(dd * dd, axis=0, keepdims=True)

    if valid_rows_last < tile_rows:
        # Only the ragged last block holds undefined out-of-bounds rows; only it
        # pays for the mask (iota + compare + select), gated by pl.when.
        r = pl.program_id(0)
        last = pl.num_programs(0) - 1

        @pl.when(r != last)
        def _():
            write(d)

        @pl.when(r == last)
        def _():
            row = lax.broadcasted_iota(jnp.int32, d.shape, 0)
            write(jnp.where(row < valid_rows_last, d, 0.0))
    else:
        write(d)


# --------------------------------------------------------------------------- #
# Pass 2 (tiled path): out = leaky_relu(f * scale + shift).
# --------------------------------------------------------------------------- #
def _normalize_kernel(f_ref, ss_ref, o_ref, *, leak):
    f = f_ref[...].astype(jnp.float32)
    y = f * ss_ref[0:1, :] + ss_ref[1:2, :]
    o_ref[...] = jnp.where(y >= 0, y, jnp.float32(leak) * y).astype(o_ref.dtype)


# --------------------------------------------------------------------------- #
# Fused fast path: whole (packed) feature matrix resident in one VMEM block ->
# stats + normalize in a single pallas_call (1R + 1W HBM traffic, one launch).
# --------------------------------------------------------------------------- #
def _fused_kernel(f_ref, k_ref, w_ref, b_ref, o_ref, *, n, pack, c, eps, leak):
    f = f_ref[...].astype(jnp.float32)
    k = k_ref[...]
    d = f - k                                                # pivot-centered
    s = jnp.sum(d, axis=0, keepdims=True)                    # (1, lanes)
    ss = jnp.sum(d * d, axis=0, keepdims=True)

    # Combine the `pack` lane groups so every lane holds its channel's full sums
    # (XLU lane rotation; summing over all group shifts is direction-agnostic).
    s_tot, ss_tot = s, ss
    for g in range(1, pack):
        s_tot = s_tot + pltpu.roll(s, g * c, axis=1)
        ss_tot = ss_tot + pltpu.roll(ss, g * c, axis=1)

    nf = jnp.float32(n)
    dmean = s_tot / nf                                       # mean - pivot
    denom = jnp.float32(max(n - 1, 1))                       # unbiased var; guard N == 1
    var = jnp.maximum((ss_tot - nf * dmean * dmean) / denom, 0.0)
    inv_std = lax.rsqrt(var + jnp.float32(eps))
    scale = w_ref[...] * inv_std
    shift = b_ref[...] - (k + dmean) * scale

    y = f * scale + shift
    o_ref[...] = jnp.where(y >= 0, y, jnp.float32(leak) * y).astype(o_ref.dtype)


@functools.partial(
    jax.jit,
    static_argnames=("eps", "leakiness", "block_packed_rows", "fused_max_bytes"))
def instance_norm_leaky_relu(features, weight, bias, *, eps=1e-5, leakiness=0.0,
                             block_packed_rows=4096,
                             fused_max_bytes=4 * 1024 * 1024):
    """features: (N, C) float array; weight/bias: (C,) affine params."""
    n, c = features.shape
    out_dtype = features.dtype

    # Lane-dense packing: place `pack` consecutive points side by side on the
    # 128-lane axis.  Only done when it is a *free* row-major bitcast
    # (N % pack == 0); otherwise fall back to the unpacked lane-sparse layout so we
    # never pay a wrapper-side jnp.pad / [:n] slice (each would be a full extra HBM
    # round trip).  Callers that bucket N to a multiple of 128 // C always get the
    # lane-dense path.
    pack = 128 // c if (c < 128 and 128 % c == 0 and n % (128 // c) == 0) else 1
    lanes = pack * c
    np_packed = n // pack
    f_packed = features.reshape(np_packed, lanes)            # free bitcast

    # Per-channel pivot (row 0): accumulate sums of (x - pivot) to reduce the
    # E[x^2] - E[x]^2 cancellation when |mean| >> std.
    k_ch = features[0].astype(jnp.float32)                   # (C,)
    k_lanes = jnp.tile(k_ch, pack).reshape(1, lanes)
    w_ch = weight.astype(jnp.float32)
    b_ch = bias.astype(jnp.float32)

    # ---------------- fused fast path: everything resident in VMEM ------------- #
    if np_packed * lanes * 4 <= fused_max_bytes:
        out_packed = pl.pallas_call(
            functools.partial(_fused_kernel, n=n, pack=pack, c=c,
                              eps=float(eps), leak=float(leakiness)),
            out_shape=jax.ShapeDtypeStruct((np_packed, lanes), out_dtype),
            grid=(1,),
            in_specs=[
                pl.BlockSpec((np_packed, lanes), lambda i: (0, 0)),
                pl.BlockSpec((1, lanes), lambda i: (0, 0)),
                pl.BlockSpec((1, lanes), lambda i: (0, 0)),
                pl.BlockSpec((1, lanes), lambda i: (0, 0)),
            ],
            out_specs=pl.BlockSpec((np_packed, lanes), lambda i: (0, 0)),
            compiler_params=pltpu.CompilerParams(
                dimension_semantics=("arbitrary",),
                vmem_limit_bytes=_VMEM_LIMIT),
        )(f_packed, k_lanes,
          jnp.tile(w_ch, pack).reshape(1, lanes),
          jnp.tile(b_ch, pack).reshape(1, lanes))
        return out_packed.reshape(n, c)

    # ---------------- tiled two-pass path --------------------------------------- #
    tile = min(max(8, (block_packed_rows // 8) * 8), _round_up(np_packed, 8))
    nt = pl.cdiv(np_packed, tile)
    valid_rows_last = np_packed - (nt - 1) * tile             # static

    # Pass 1: per-tile partial (sum, sumsq); fully parallel over row tiles.
    sums, sumsqs = pl.pallas_call(
        functools.partial(_stats_kernel, valid_rows_last=valid_rows_last,
                          tile_rows=tile),
        out_shape=(jax.ShapeDtypeStruct((nt, lanes), jnp.float32),
                   jax.ShapeDtypeStruct((nt, lanes), jnp.float32)),
        grid=(nt,),
        in_specs=[
            pl.BlockSpec((tile, lanes), lambda r: (r, 0)),
            pl.BlockSpec((1, lanes), lambda r: (0, 0)),
        ],
        out_specs=(pl.BlockSpec((1, lanes), lambda r: (r, 0)),
                   pl.BlockSpec((1, lanes), lambda r: (r, 0))),
        compiler_params=pltpu.CompilerParams(
            dimension_semantics=("parallel",),
            vmem_limit_bytes=_VMEM_LIMIT),
    )(f_packed, k_lanes)

    # Tiny XLA epilogue (<= a few KiB): reduce partials, finalize per-channel
    # (scale, shift) = (w * inv_std, b - mean * w * inv_std).
    s_ch = sums.sum(axis=0).reshape(pack, c).sum(axis=0)       # (C,)
    ss_ch = sumsqs.sum(axis=0).reshape(pack, c).sum(axis=0)
    mean = k_ch + s_ch / n
    denom = max(n - 1, 1)                                      # guard unbiased var at N == 1
    var = jnp.maximum((ss_ch - s_ch * s_ch / n) / denom, 0.0)
    inv_std = lax.rsqrt(var + eps)
    scale_c = w_ch * inv_std
    shift_c = b_ch - mean * scale_c
    scale_shift = jnp.stack([jnp.tile(scale_c, pack), jnp.tile(shift_c, pack)], axis=0)

    # Pass 2: elementwise normalize + LeakyReLU, parallel over row tiles.
    out_packed = pl.pallas_call(
        functools.partial(_normalize_kernel, leak=float(leakiness)),
        out_shape=jax.ShapeDtypeStruct((np_packed, lanes), out_dtype),
        grid=(nt,),
        in_specs=[
            pl.BlockSpec((tile, lanes), lambda r: (r, 0)),
            pl.BlockSpec((2, lanes), lambda r: (0, 0)),
        ],
        out_specs=pl.BlockSpec((tile, lanes), lambda r: (r, 0)),
        compiler_params=pltpu.CompilerParams(
            dimension_semantics=("parallel",),
            vmem_limit_bytes=_VMEM_LIMIT),
    )(f_packed, scale_shift)

    return out_packed.reshape(n, c)


if __name__ == "__main__":
    C = 32
    eps = 1e-5
    leakiness = 0.1  # module default is 0.0; nonzero exercises the leaky path

    # Deterministic parameter init per _Normalization.reset_parameters():
    # weight <- ones(num_features), bias <- zeros(num_features).
    weight = jnp.ones((C,), dtype=jnp.float32)
    bias = jnp.zeros((C,), dtype=jnp.float32)
    # TODO(synk): running_mean/running_var/num_batches_tracked buffers are registered
    # but never used in forward(), so they are omitted here.

    def reference(f):
        mean = jnp.mean(f, axis=0)
        var = jnp.var(f, axis=0, ddof=1)        # torch.var default is unbiased
        fn = (f - mean) / jnp.sqrt(var + eps)
        fn = weight * fn + bias
        return jnp.where(fn >= 0, fn, leakiness * fn)

    key = jax.random.PRNGKey(0)

    # Case 1: N multiple of 128//C -> lane-dense packing + fused single-call path.
    N1 = 300
    f1 = jax.random.normal(key, (N1, C), dtype=jnp.float32) * 2.0 + 0.5
    out1 = jax.block_until_ready(
        instance_norm_leaky_relu(f1, weight, bias, eps=eps, leakiness=leakiness))
    assert out1.shape == (N1, C)
    assert jnp.allclose(out1, reference(f1), atol=5e-4, rtol=5e-4), "mismatch (fused)"

    # Case 2: N not a multiple of 128//C -> lane-sparse fallback, forced onto the
    # tiled two-pass path with a ragged last tile (exercises the pl.when mask).
    N2 = 301
    f2 = jax.random.normal(jax.random.PRNGKey(0), (N2, C), dtype=jnp.float32) * 2.0 + 0.5
    out2 = jax.block_until_ready(
        instance_norm_leaky_relu(f2, weight, bias, eps=eps, leakiness=leakiness,
                                 block_packed_rows=16, fused_max_bytes=0))
    assert out2.shape == (N2, C)
    assert jnp.allclose(out2, reference(f2), atol=5e-4, rtol=5e-4), "mismatch (ragged tiled)"

    # Case 3: lane-dense tiled two-pass path across several row tiles.
    N3 = 4096
    f3 = jax.random.normal(jax.random.PRNGKey(1), (N3, C), dtype=jnp.float32) * 2.0 + 0.5
    out3 = jax.block_until_ready(
        instance_norm_leaky_relu(f3, weight, bias, eps=eps, leakiness=leakiness,
                                 block_packed_rows=256, fused_max_bytes=0))
    assert out3.shape == (N3, C)
    assert jnp.allclose(out3, reference(f3), atol=5e-4, rtol=5e-4), "mismatch (tiled)"

    print("KERNEL_OK")
</pallas_src>

<mosaic_0001>
module attributes {stable_mosaic.version = 11 : i64} {
  func.func @_fused_kernel(%arg0: i32, %arg1: memref<75x128xf32, #tpu.memory_space<vmem>>, %arg2: memref<1x128xf32, #tpu.memory_space<vmem>>, %arg3: memref<1x128xf32, #tpu.memory_space<vmem>>, %arg4: memref<1x128xf32, #tpu.memory_space<vmem>>, %arg5: memref<75x128xf32, #tpu.memory_space<vmem>>) attributes {dimension_semantics = [#tpu.dimension_semantics<arbitrary>], iteration_bounds = array<i64: 1>, scalar_prefetch = 0 : i64, scratch_operands = 0 : i64, tpu.core_type = #tpu.core_type<tc>, window_params = [{pipeline_mode = #tpu.pipeline_mode<synchronous>, transform_indices = @transform_0, window_bounds = array<i64: 75, 128>}, {pipeline_mode = #tpu.pipeline_mode<synchronous>, transform_indices = @transform_1, window_bounds = array<i64: 1, 128>}, {pipeline_mode = #tpu.pipeline_mode<synchronous>, transform_indices = @transform_2, window_bounds = array<i64: 1, 128>}, {pipeline_mode = #tpu.pipeline_mode<synchronous>, transform_indices = @transform_3, window_bounds = array<i64: 1, 128>}, {pipeline_mode = #tpu.pipeline_mode<synchronous>, transform_indices = @transform_4, window_bounds = array<i64: 75, 128>}]} {
    %c0 = arith.constant 0 : index
    %c0_0 = arith.constant 0 : index
    %0 = vector.load %arg1[%c0, %c0_0] : memref<75x128xf32, #tpu.memory_space<vmem>>, vector<75x128xf32>
    %c0_1 = arith.constant 0 : index
    %c0_2 = arith.constant 0 : index
    %1 = vector.load %arg2[%c0_1, %c0_2] : memref<1x128xf32, #tpu.memory_space<vmem>>, vector<1x128xf32>
    %2 = vector.broadcast %1 : vector<1x128xf32> to vector<75x128xf32>
    %3 = arith.subf %0, %2 : vector<75x128xf32>
    %cst = arith.constant dense<0.000000e+00> : vector<128xf32>
    %4 = vector.multi_reduction <add>, %3, %cst [0] : vector<75x128xf32> to vector<128xf32>
    %5 = vector.shape_cast %4 : vector<128xf32> to vector<1x128xf32>
    %6 = arith.mulf %3, %3 : vector<75x128xf32>
    %cst_3 = arith.constant dense<0.000000e+00> : vector<128xf32>
    %7 = vector.multi_reduction <add>, %6, %cst_3 [0] : vector<75x128xf32> to vector<128xf32>
    %8 = vector.shape_cast %7 : vector<128xf32> to vector<1x128xf32>
    %c32_i32 = arith.constant 32 : i32
    %9 = tpu.dynamic_rotate %5 by %c32_i32 dim 1 : vector<1x128xf32>, i32 -> vector<1x128xf32>
    %10 = arith.addf %5, %9 : vector<1x128xf32>
    %c32_i32_4 = arith.constant 32 : i32
    %11 = tpu.dynamic_rotate %8 by %c32_i32_4 dim 1 : vector<1x128xf32>, i32 -> vector<1x128xf32>
    %12 = arith.addf %8, %11 : vector<1x128xf32>
    %c64_i32 = arith.constant 64 : i32
    %13 = tpu.dynamic_rotate %5 by %c64_i32 dim 1 : vector<1x128xf32>, i32 -> vector<1x128xf32>
    %14 = arith.addf %10, %13 : vector<1x128xf32>
    %c64_i32_5 = arith.constant 64 : i32
    %15 = tpu.dynamic_rotate %8 by %c64_i32_5 dim 1 : vector<1x128xf32>, i32 -> vector<1x128xf32>
    %16 = arith.addf %12, %15 : vector<1x128xf32>
    %c96_i32 = arith.constant 96 : i32
    %17 = tpu.dynamic_rotate %5 by %c96_i32 dim 1 : vector<1x128xf32>, i32 -> vector<1x128xf32>
    %18 = arith.addf %14, %17 : vector<1x128xf32>
    %c96_i32_6 = arith.constant 96 : i32
    %19 = tpu.dynamic_rotate %8 by %c96_i32_6 dim 1 : vector<1x128xf32>, i32 -> vector<1x128xf32>
    %20 = arith.addf %16, %19 : vector<1x128xf32>
    %cst_7 = arith.constant 3.000000e+02 : f32
    %21 = vector.broadcast %cst_7 : f32 to vector<1x128xf32>
    %22 = arith.divf %18, %21 : vector<1x128xf32>
    %cst_8 = arith.constant 3.000000e+02 : f32
    %23 = vector.broadcast %cst_8 : f32 to vector<1x128xf32>
    %24 = arith.mulf %23, %22 : vector<1x128xf32>
    %25 = arith.mulf %24, %22 : vector<1x128xf32>
    %26 = arith.subf %20, %25 : vector<1x128xf32>
    %cst_9 = arith.constant 2.990000e+02 : f32
    %27 = vector.broadcast %cst_9 : f32 to vector<1x128xf32>
    %28 = arith.divf %26, %27 : vector<1x128xf32>
    %cst_10 = arith.constant 0.000000e+00 : f32
    %29 = vector.broadcast %cst_10 : f32 to vector<1x128xf32>
    %30 = arith.maximumf %28, %29 : vector<1x128xf32>
    %cst_11 = arith.constant 9.99999974E-6 : f32
    %31 = vector.broadcast %cst_11 : f32 to vector<1x128xf32>
    %32 = arith.addf %30, %31 : vector<1x128xf32>
    %33 = math.rsqrt %32 : vector<1x128xf32>
    %c0_12 = arith.constant 0 : index
    %c0_13 = arith.constant 0 : index
    %34 = vector.load %arg3[%c0_12, %c0_13] : memref<1x128xf32, #tpu.memory_space<vmem>>, vector<1x128xf32>
    %35 = arith.mulf %34, %33 : vector<1x128xf32>
    %c0_14 = arith.constant 0 : index
    %c0_15 = arith.constant 0 : index
    %36 = vector.load %arg4[%c0_14, %c0_15] : memref<1x128xf32, #tpu.memory_space<vmem>>, vector<1x128xf32>
    %37 = arith.addf %1, %22 : vector<1x128xf32>
    %38 = arith.mulf %37, %35 : vector<1x128xf32>
    %39 = arith.subf %36, %38 : vector<1x128xf32>
    %40 = vector.broadcast %35 : vector<1x128xf32> to vector<75x128xf32>
    %41 = arith.mulf %0, %40 : vector<75x128xf32>
    %42 = vector.broadcast %39 : vector<1x128xf32> to vector<75x128xf32>
    %43 = arith.addf %41, %42 : vector<75x128xf32>
    %cst_16 = arith.constant 0.000000e+00 : f32
    %44 = vector.broadcast %cst_16 : f32 to vector<75x128xf32>
    %45 = arith.cmpf oge, %43, %44 : vector<75x128xf32>
    %cst_17 = arith.constant 1.000000e-01 : f32
    %46 = vector.broadcast %cst_17 : f32 to vector<75x128xf32>
    %47 = arith.mulf %46, %43 : vector<75x128xf32>
    %48 = arith.select %45, %43, %47 : vector<75x128xi1>, vector<75x128xf32>
    %c0_18 = arith.constant 0 : index
    %c0_19 = arith.constant 0 : index
    %49 = vector.load %arg5[%c0_18, %c0_19] : memref<75x128xf32, #tpu.memory_space<vmem>>, vector<75x128xf32>
    tpu.vector_store %arg5[%c0_18, %c0_19], %48 {strides = array<i32>} : memref<75x128xf32, #tpu.memory_space<vmem>>, vector<75x128xf32>,
    return
  }
  func.func @transform_0(%arg0: i32) -> (i32, i32) {
    %c0_i32 = arith.constant 0 : i32
    %c0_i32_0 = arith.constant 0 : i32
    %c0_i32_1 = arith.constant 0 : i32
    return %c0_i32, %c0_i32_0 : i32, i32
  }
  func.func @transform_1(%arg0: i32) -> (i32, i32) {
    %c0_i32 = arith.constant 0 : i32
    %c0_i32_0 = arith.constant 0 : i32
    %c0_i32_1 = arith.constant 0 : i32
    return %c0_i32, %c0_i32_0 : i32, i32
  }
  func.func @transform_2(%arg0: i32) -> (i32, i32) {
    %c0_i32 = arith.constant 0 : i32
    %c0_i32_0 = arith.constant 0 : i32
    %c0_i32_1 = arith.constant 0 : i32
    return %c0_i32, %c0_i32_0 : i32, i32
  }
  func.func @transform_3(%arg0: i32) -> (i32, i32) {
    %c0_i32 = arith.constant 0 : i32
    %c0_i32_0 = arith.constant 0 : i32
    %c0_i32_1 = arith.constant 0 : i32
    return %c0_i32, %c0_i32_0 : i32, i32
  }
  func.func @transform_4(%arg0: i32) -> (i32, i32) {
    %c0_i32 = arith.constant 0 : i32
    %c0_i32_0 = arith.constant 0 : i32
    %c0_i32_1 = arith.constant 0 : i32
    return %c0_i32, %c0_i32_0 : i32, i32
  }
}

</mosaic_0001>

<bundles_post_ra>
// kernel: tile.16
= control target key start
LH: loop header
LB: loop body
LE: loop exit
PB: predicated region body
PF: predicated region fallthrough
CT: control target
= control target key end

     0   :  { %s22_s0 = inlined_call_operand.vmem [shape: f32[32], index: 0, kind: input, shape index: {}]   ;;  %s23_s1 = inlined_call_operand.vmem [shape: f32[4,32], index: 1, kind: output, shape index: {}]  }
   0x1   :  { %v4_v0 = vld [vmem:[%s22_s0] ss:$0 sm:$0xff] }
   0x2   :  { %5 = vst [vmem:[%s23_s1] sm:$0xf] %v4_v0 }

// kernel: tile.17
= control target key start
LH: loop header
LB: loop body
LE: loop exit
PB: predicated region body
PF: predicated region fallthrough
CT: control target
= control target key end

     0   :  { %vm7_vm0 = vcmask 261120   ;;  %s37_s8 = smov 32   ;;  %s38_s9 = smov 64   ;;  %vm13_vm1 = vcmask 1048320   ;;  %vm19_vm2 = vcmask 785920   ;;  %vm25_vm3 = vcmask 523520   ;;  %s55_s0 = inlined_call_operand.vmem [shape: f32[4,32], index: 0, kind: input, shape index: {}]   ;;  %s56_s1 = inlined_call_operand.vmem [shape: f32[1,128], index: 1, kind: output, shape index: {}]  }
   0x1   :  { %v4_v0 = vld [vmem:[%s55_s0] sm:$0xf]  ;;  %s36_s0 = smov 96  }
   0x2   :  { %5 = vst [vmem:[#allocation1] sm:$0xf] %v4_v0 }
   0x9   :  { %v10_v1 = vld [vmem:[#allocation1 + $0x3] sm:$0x1]   ;;  %v22_v2 = vld [vmem:[#allocation1 + $0x1] sm:$0x1]   ;;  %v6_v3 = vld [vmem:[#allocation1] sm:$0x1]  }
   0xa   :  { %11 = vrot.lane.b32.xlu0 %v10_v1, %s36_s0  ;;  %23 = vrot.lane.b32.xlu1 %v22_v2, %s37_s8  ;;  %v16_v4 = vld [vmem:[#allocation1 + $0x2] sm:$0x1]   ;;  %8 = vst.msk [vmem:[#allocation0] sm:$0x1] %vm7_vm0, %v6_v3  }
   0xe   :  { %17 = vrot.lane.b32.xlu0 %v16_v4, %s38_s9 }
  0x7c   :  { %v12_v5 = vpop.permute.xlu0 %11   ;;  %v24_v6 = vpop.permute.xlu1 %23  }
  0x7d   :  { %14 = vst.msk [vmem:[#allocation0] sm:$0x1] %vm13_vm1, %v12_v5  }
  0x80   :  { %v18_v7 = vpop.permute.xlu0 %17  }
  0x81   :  { %20 = vst.msk [vmem:[#allocation0] sm:$0x1] %vm19_vm2, %v18_v7  }
  0x82   :  { %26 = vst.msk [vmem:[#allocation0] sm:$0x1] %vm25_vm3, %v24_v6  }
  0x89   :  { %v30_v8 = vld [vmem:[#allocation0] sm:$0x1] }
  0x8a   :  { %32 = vst [vmem:[%s56_s1] sm:$0x1] %v30_v8 }

// kernel: instance_norm_leaky_relu.1
= control target key start
LH: loop header
LB: loop body
LE: loop exit
PB: predicated region body
PF: predicated region fallthrough
CT: control target
= control target key end

     0   :  { %v29_v0 = vlaneseq  ;;  %vm52_vm0 = vcmask 1042432   ;;  %s203_s10 = smov 96   ;;  %s204_s11 = smov 64   ;;  %s358_s1 = inlined_call_operand.vmem [shape: f32[1,128], index: 1, kind: input, shape index: {}]   ;;  %s359_s0 = inlined_call_operand.vmem [shape: f32[75,128], index: 0, kind: input, shape index: {}]   ;;  %s360_s2 = inlined_call_operand.vmem [shape: f32[1,128], index: 2, kind: input, shape index: {}]   ;;  %s361_s3 = inlined_call_operand.vmem [shape: f32[1,128], index: 3, kind: input, shape index: {}]   ;;  %s362_s4 = inlined_call_operand.vmem [shape: f32[75,128], index: 4, kind: output, shape index: {}]  }
   0x1   :  { %v233_v2 = vld [vmem:[%s358_s1] sm:$0x1]  ;;  %v245_v5 = vld [vmem:[%s359_s0 + $0x8] sm:$0xff]  ;;  %v250_v6 = vld [vmem:[%s359_s0 + $0x10] sm:$0xff] }
   0x2   :  { %v30_v1 = vshrl.u32 %v29_v0, 7  ;;  %v240_v4 = vld [vmem:[%s359_s0] sm:$0xff]  ;;  %v257_v8 = vld [vmem:[%s359_s0 + $0x18] sm:$0xff]  ;;  %v271_v16 = vld [vmem:[%s359_s0 + $0x28] sm:$0xff] }
   0x3   :  { %v265_v12 = vld [vmem:[%s359_s0 + $0x20] sm:$0xff]  ;;  %v277_v21 = vld [vmem:[%s359_s0 + $0x30] sm:$0xff]  ;;  %v283_v26 = vld [vmem:[%s359_s0 + $0x38] sm:$0xff] }
   0x4   :  { %v235_v3 = vsub.s32 0, %v30_v1  ;;  %v288_v29 = vld [vmem:[%s359_s0 + $0x48] sm:$0x7]  ;;  %v294_v32 = vld [vmem:[%s359_s0 + $0x40] sm:$0xff]  ;;  %s202_s0 = smov 32  }
   0x6   :  { %v32_v7 = vrot.slane %v233_v2, %v235_v3 }
   0x8   :  { %v34_v9 = vsub.f32 %v240_v4, %v32_v7  ;;  %v35_v10 = vsub.f32 %v245_v5, %v32_v7  ;;  %v36_v11 = vsub.f32 %v250_v6, %v32_v7  ;;  %v37_v13 = vsub.f32 %v257_v8, %v32_v7 }
   0x9   :  { %v38_v19 = vsub.f32 %v265_v12, %v32_v7  ;;  %v39_v24 = vsub.f32 %v271_v16, %v32_v7  ;;  %v40_v30 = vsub.f32 %v277_v21, %v32_v7  ;;  %v41_v35 = vsub.f32 %v283_v26, %v32_v7 }
   0xa   :  { %v44_v14 = vadd.f32 %v35_v10, %v34_v9  ;;  %v61_v15 = vmul.f32 %v34_v9, %v34_v9  ;;  %v62_v17 = vmul.f32 %v35_v10, %v35_v10  ;;  %v63_v18 = vmul.f32 %v36_v11, %v36_v11 }
   0xb   :  { %v64_v22 = vmul.f32 %v37_v13, %v37_v13  ;;  %v65_v27 = vmul.f32 %v38_v19, %v38_v19  ;;  %v66_v33 = vmul.f32 %v39_v24, %v39_v24  ;;  %v43_v37 = vsub.f32 %v288_v29, %v32_v7 }
   0xc   :  { %v45_v20 = vadd.f32 %v44_v14, %v36_v11  ;;  %v71_v23 = vadd.f32 %v62_v17, %v61_v15  ;;  %v67_v38 = vmul.f32 %v40_v30, %v40_v30  ;;  %v42_v40 = vsub.f32 %v294_v32, %v32_v7 }
   0xd   :  { %v68_v42 = vmul.f32 %v41_v35, %v41_v35  ;;  %v70_v45 = vmul.f32 %v43_v37, %v43_v37  ;;  %v53_v46 = vsel %vm52_vm0, %v43_v37, 0.0 }
   0xe   :  { %v46_v25 = vadd.f32 %v45_v20, %v37_v13  ;;  %v72_v28 = vadd.f32 %v71_v23, %v63_v18  ;;  %v69_v47 = vmul.f32 %v42_v40, %v42_v40 }
   0xf   :  { %v79_v52 = vsel %vm52_vm0, %v70_v45, 0.0 }
  0x10   :  { %v47_v31 = vadd.f32 %v46_v25, %v38_v19  ;;  %v73_v34 = vadd.f32 %v72_v28, %v64_v22 }
  0x12   :  { %v48_v36 = vadd.f32 %v47_v31, %v39_v24  ;;  %v74_v39 = vadd.f32 %v73_v34, %v65_v27  ;;  %v115_v34 = vld [vmem:[%s360_s2] sm:$0x1] }
  0x14   :  { %v49_v41 = vadd.f32 %v48_v36, %v40_v30  ;;  %v75_v43 = vadd.f32 %v74_v39, %v66_v33 }
  0x16   :  { %v50_v44 = vadd.f32 %v49_v41, %v41_v35  ;;  %v76_v48 = vadd.f32 %v75_v43, %v67_v38  ;;  %v117_v38 = vld [vmem:[%s361_s3] sm:$0x1] }
  0x18   :  { %v51_v49 = vadd.f32 %v50_v44, %v42_v40  ;;  %v77_v50 = vadd.f32 %v76_v48, %v68_v42 }
  0x1a   :  { %v54_v51 = vadd.f32 %v53_v46, %v51_v49  ;;  %v78_v53 = vadd.f32 %v77_v50, %v69_v47 }
  0x1c   :  { %v55_v54 = vrot.slane %v54_v51, 4  ;;  %v80_v55 = vadd.f32 %v79_v52, %v78_v53 }
  0x1e   :  { %v56_v56 = vadd.f32 %v55_v54, %v54_v51  ;;  %v81_v57 = vrot.slane %v80_v55, 4 }
  0x20   :  { %v57_v58 = vrot.slane %v56_v56, 2  ;;  %v82_v59 = vadd.f32 %v81_v57, %v80_v55 }
  0x22   :  { %v58_v60 = vadd.f32 %v57_v58, %v56_v56  ;;  %v83_v61 = vrot.slane %v82_v59, 2 }
  0x24   :  { %v59_v62 = vrot.slane %v58_v60, 1  ;;  %v84_v63 = vadd.f32 %v83_v61, %v82_v59 }
  0x26   :  { %v60_v0 = vadd.f32 %v59_v62, %v58_v60  ;;  %v85_v1 = vrot.slane %v84_v63, 1 }
  0x28   :  { %87 = vrot.lane.b32.xlu0 %v60_v0, %s202_s0  ;;  %99 = vrot.lane.b32.xlu1 %v60_v0, %s203_s10  ;;  %v86_v7 = vadd.f32 %v85_v1, %v84_v63 }
  0x2c   :  { %93 = vrot.lane.b32.xlu0 %v60_v0, %s204_s11  ;;  %90 = vrot.lane.b32.xlu1 %v86_v7, %s202_s0 }
  0x30   :  { %96 = vrot.lane.b32.xlu0 %v86_v7, %s204_s11  ;;  %102 = vrot.lane.b32.xlu1 %v86_v7, %s203_s10 }
  0x9a   :  { %v88_v9 = vpop.permute.xlu0 %87  ;;  %v100_v10 = vpop.permute.xlu1 %99 }
  0x9b   :  { %v89_v11 = vadd.f32 %v88_v9, %v60_v0 }
  0x9e   :  { %v94_v13 = vpop.permute.xlu0 %93  ;;  %v91_v14 = vpop.permute.xlu1 %90 }
  0x9f   :  { %v95_v15 = vadd.f32 %v94_v13, %v89_v11  ;;  %v92_v17 = vadd.f32 %v91_v14, %v86_v7 }
  0xa1   :  { %v101_v18 = vadd.f32 %v100_v10, %v95_v15 }
  0xa2   :  { %v97_v19 = vpop.permute.xlu0 %96  ;;  %v103_v20 = vpop.permute.xlu1 %102 }
  0xa3   :  { %v106_v22 = vmul.f32 0.0033333334, %v101_v18  ;;  %v98_v23 = vadd.f32 %v97_v19, %v92_v17 }
  0xa5   :  { %v104_v24 = vadd.f32 %v103_v20, %v98_v23  ;;  %v107_v25 = vmul.f32 300.0, %v106_v22  ;;  %v118_v36 = vadd.f32 %v106_v22, %v233_v2 }
  0xa7   :  { %v108_v27 = vmul.f32 %v107_v25, %v106_v22 }
  0xa9   :  { %v109_v28 = vsub.f32 %v104_v24, %v108_v27 }
  0xab   :  { %v111_v30 = vmul.f32 0.0033444816, %v109_v28 }
  0xad   :  { %v112_v31 = vmax.f32 %v111_v30, 0.0 }
  0xaf   :  { %v113_v33 = vadd.f32 1e-05, %v112_v31 }
  0xb1   :  { %200 = vrsqrt.f32 %v113_v33 }
  0xbb   :  { %v201_v35 = vpop.eup %200 }
  0xbc   :  { %v116_v37 = vmul.f32 %v201_v35, %v115_v34 }
  0xbe   :  { %v119_v39 = vmul.f32 %v118_v36, %v116_v37  ;;  %v125_v40 = vrot.slane %v116_v37, %v235_v3 }
  0xc0   :  { %v120_v41 = vsub.f32 %v117_v38, %v119_v39  ;;  %v127_v42 = vmul.f32 %v125_v40, %v240_v4  ;;  %v128_v43 = vmul.f32 %v125_v40, %v245_v5  ;;  %v129_v44 = vmul.f32 %v125_v40, %v250_v6 }
  0xc1   :  { %v130_v45 = vmul.f32 %v125_v40, %v257_v8  ;;  %v131_v46 = vmul.f32 %v125_v40, %v265_v12  ;;  %v132_v2 = vmul.f32 %v125_v40, %v271_v16  ;;  %v133_v48 = vmul.f32 %v125_v40, %v277_v21 }
  0xc2   :  { %v141_v47 = vrot.slane %v120_v41, %v235_v3  ;;  %v134_v49 = vmul.f32 %v125_v40, %v283_v26  ;;  %v135_v50 = vmul.f32 %v125_v40, %v294_v32  ;;  %v136_v4 = vmul.f32 %v125_v40, %v288_v29 }
  0xc4   :  { %v143_v51 = vadd.f32 %v141_v47, %v127_v42  ;;  %v144_v5 = vadd.f32 %v141_v47, %v128_v43  ;;  %v145_v52 = vadd.f32 %v141_v47, %v129_v44  ;;  %v146_v6 = vadd.f32 %v141_v47, %v130_v45 }
  0xc5   :  { %v147_v53 = vadd.f32 %v141_v47, %v131_v46  ;;  %v148_v8 = vadd.f32 %v141_v47, %v132_v2  ;;  %v149_v54 = vadd.f32 %v141_v47, %v133_v48  ;;  %v150_v12 = vadd.f32 %v141_v47, %v134_v49 }
  0xc6   :  { %v151_v55 = vadd.f32 %v141_v47, %v135_v50  ;;  %v152_v16 = vadd.f32 %v141_v47, %v136_v4  ;;  %vm153_vm1 = vcmp.ge.f32.partialorder %v143_v51, 0.0  ;;  %vm154_vm2 = vcmp.ge.f32.partialorder %v144_v5, 0.0 }
  0xc7   :  { %vm155_vm3 = vcmp.ge.f32.partialorder %v145_v52, 0.0  ;;  %vm156_vm4 = vcmp.ge.f32.partialorder %v146_v6, 0.0  ;;  %vm157_vm5 = vcmp.ge.f32.partialorder %v147_v53, 0.0  ;;  %vm158_vm6 = vcmp.ge.f32.partialorder %v148_v8, 0.0 }
  0xc8   :  { %vm159_vm7 = vcmp.ge.f32.partialorder %v149_v54, 0.0  ;;  %vm160_vm8 = vcmp.ge.f32.partialorder %v150_v12, 0.0  ;;  %vm161_vm9 = vcmp.ge.f32.partialorder %v151_v55, 0.0  ;;  %vm162_vm10 = vcmp.ge.f32.partialorder %v152_v16, 0.0 }
  0xc9   :  { %v163_v3 = vmul.f32 0.1, %v143_v51  ;;  %v164_v21 = vmul.f32 0.1, %v144_v5  ;;  %v165_v26 = vmul.f32 0.1, %v145_v52 }
  0xca   :  { %v166_v29 = vmul.f32 0.1, %v146_v6  ;;  %v167_v32 = vmul.f32 0.1, %v147_v53  ;;  %v168_v56 = vmul.f32 0.1, %v148_v8 }
  0xcb   :  { %v169_v57 = vmul.f32 0.1, %v149_v54  ;;  %v170_v58 = vmul.f32 0.1, %v150_v12  ;;  %v171_v59 = vmul.f32 0.1, %v151_v55  ;;  %v173_v60 = vsel %vm153_vm1, %v143_v51, %v163_v3 }
  0xcc   :  { %v172_v61 = vmul.f32 0.1, %v152_v16  ;;  %v174_v62 = vsel %vm154_vm2, %v144_v5, %v164_v21  ;;  %v175_v63 = vsel %vm155_vm3, %v145_v52, %v165_v26  ;;  %v176_v0 = vsel %vm156_vm4, %v146_v6, %v166_v29  ;;  %183 = vst [vmem:[%s362_s4] sm:$0xff] %v173_v60 }
  0xcd   :  { %v177_v1 = vsel %vm157_vm5, %v147_v53, %v167_v32  ;;  %v178_v7 = vsel %vm158_vm6, %v148_v8, %v168_v56  ;;  %v179_v9 = vsel %vm159_vm7, %v149_v54, %v169_v57  ;;  %v180_v10 = vsel %vm160_vm8, %v150_v12, %v170_v58  ;;  %184 = vst [vmem:[%s362_s4 + $0x8] sm:$0xff] %v174_v62 }
  0xce   :  { %185 = vst [vmem:[%s362_s4 + $0x10] sm:$0xff] %v175_v63  ;;  %186 = vst [vmem:[%s362_s4 + $0x18] sm:$0xff] %v176_v0  ;;  %v181_v11 = vsel %vm161_vm9, %v151_v55, %v171_v59  ;;  %v182_v13 = vsel %vm162_vm10, %v152_v16, %v172_v61 }
  0xcf   :  { %187 = vst [vmem:[%s362_s4 + $0x20] sm:$0xff] %v177_v1  ;;  %188 = vst [vmem:[%s362_s4 + $0x28] sm:$0xff] %v178_v7 }
  0xd0   :  { %189 = vst [vmem:[%s362_s4 + $0x30] sm:$0xff] %v179_v9  ;;  %190 = vst [vmem:[%s362_s4 + $0x38] sm:$0xff] %v180_v10 }
  0xd1   :  { %191 = vst [vmem:[%s362_s4 + $0x40] sm:$0xff] %v181_v11  ;;  %192 = vst [vmem:[%s362_s4 + $0x48] sm:$0x7] %v182_v13 }

</bundles_post_ra>
